<compile_context>
chip_gen: v6e
topology: v6e:2x2x1
jax: 0.10.0
libtpu: 0.0.40
codegen_flags: <defaults>
</compile_context>

<pallas_src>
import functools

import numpy as np
import jax
import jax.numpy as jnp
from jax import lax
from jax.experimental import pallas as pl
from jax.experimental.pallas import tpu as pltpu


_UNROLL_CAP = 8  # fully unroll the time loop only for nt-1 <= this


# -----------------------------------------------------------------------------
# Pallas kernel: velocity Verlet (periodic BC) + WaveEnergyComponentField
# -----------------------------------------------------------------------------
def _verlet_energy_kernel(u_ref, ut_ref, vel_ref, out_ref, *, dx, dt, nt, H, W, Bt):
    inv_dx = 1.0 / dx
    inv_dx2 = 1.0 / (dx * dx)
    half_dt = 0.5 * dt
    half_dt2 = 0.5 * dt * dt

    # Hoisted (loop-invariant) masks for zeroing the first row / column of the
    # one-sided differences.  Computed once, reused for every batch plane.
    row0 = lax.broadcasted_iota(jnp.int32, (H, W), 0) == 0
    col0 = lax.broadcasted_iota(jnp.int32, (H, W), 1) == 0

    def lap5(v):
        # Periodic 5-point stencil sum (unscaled).  Also returns the +1 shifts
        # so the epilogue can reuse them on the peeled last Verlet step.
        vm = pltpu.roll(v, 1, axis=0)        # v[i-1, j]
        vp = pltpu.roll(v, H - 1, axis=0)    # v[i+1, j]
        vl = pltpu.roll(v, 1, axis=1)        # v[i, j-1]
        vr = pltpu.roll(v, W - 1, axis=1)    # v[i, j+1]
        return (vm + vp) + (vl + vr) - 4.0 * v, vm, vl

    for b in range(Bt):
        u = u_ref[b]            # (H, W) f32
        ut = ut_ref[b]          # (H, W) f32
        c = vel_ref[b]          # (H, W) f32

        cfac = (c * c) * inv_dx2
        hdt2_c = half_dt2 * cfac       # 0.5*dt^2 * c^2/dx^2  (loop-invariant)
        hdt_c = half_dt * cfac         # 0.5*dt   * c^2/dx^2  (loop-invariant)

        def verlet_step(u_c, ut_c, lap_c):
            # a_old is carried (lap_c) from the previous step -> only ONE
            # Laplacian (4 rolls) evaluated per step.
            u_n = u_c + dt * ut_c + hdt2_c * lap_c
            lap_n, um, ul = lap5(u_n)
            ut_n = ut_c + hdt_c * (lap_c + lap_n)
            return u_n, ut_n, lap_n, um, ul

        if nt >= 1:
            lap, _, _ = lap5(u)        # prologue: lap(u_0), the only extra Laplacian
            n_inner = nt - 1
            if n_inner > 0:
                if n_inner <= _UNROLL_CAP:
                    for _ in range(n_inner):
                        u, ut, lap, _, _ = verlet_step(u, ut, lap)
                else:
                    def body(_, carry):
                        uu, vv, ll = carry
                        uu, vv, ll, _, _ = verlet_step(uu, vv, ll)
                        return (uu, vv, ll)
                    u, ut, lap = lax.fori_loop(0, n_inner, body, (u, ut, lap),
                                               unroll=4)
            # Peeled last step: reuse its +1 rolls for the one-sided differences
            # (saves 2 XLU rolls in the epilogue).
            u, ut, lap, u_up1, u_left1 = verlet_step(u, ut, lap)
        else:
            u_up1 = pltpu.roll(u, 1, axis=0)
            u_left1 = pltpu.roll(u, 1, axis=1)

        # WaveEnergyComponentField: one-sided spatial diffs (first row/col zero)
        wx = jnp.where(row0, 0.0, (u - u_up1) * inv_dx)
        wy = jnp.where(col0, 0.0, (u - u_left1) * inv_dx)
        wtc = ut * pl.reciprocal(c)    # exact reciprocal (wtc feeds further numerics)

        out_ref[b, 0, :, :] = wx.astype(out_ref.dtype)
        out_ref[b, 1, :, :] = wy.astype(out_ref.dtype)
        out_ref[b, 2, :, :] = wtc.astype(out_ref.dtype)
        # Channel 3 (vel) is preserved via input_output_aliases; never rewritten.


# -----------------------------------------------------------------------------
# Block sizing / VMEM budget
# -----------------------------------------------------------------------------
def _vmem_budget_bytes():
    try:
        cap = int(pltpu.get_tpu_info().vmem_capacity_bytes)
    except Exception:
        cap = 64 * 2 ** 20   # conservative: v7x has 64 MiB per TensorCore
    return (3 * cap) // 4    # leave headroom for compiler-internal scratch


def _pick_batch_block(B, H, W, vmem_budget):
    """Largest divisor of B whose block footprint fits the VMEM budget."""
    plane_bytes = H * W * 4
    # per batch element: (u + ut + vel) input blocks + 3-channel output block,
    # double buffered, plus ~8 live plane-sized temporaries inside the kernel.
    per_b = plane_bytes * ((3 + 3) * 2 + 8)
    cap = max(1, min(B, 8, vmem_budget // max(per_b, 1)))
    if B >= 2:
        # Keep >= 2 grid blocks so multi-TensorCore chips can split the batch
        # axis; per-grid-step overhead (~0.35us) stays negligible.
        cap = min(cap, B // 2)
    cap = max(int(cap), 1)
    bt = 1
    for d in range(1, cap + 1):
        if B % d == 0:
            bt = d
    return bt


def _verlet_energy_pallas(u0, ut0, restr_output, *, dx, dt, nt):
    B, H, W = u0.shape
    budget = _vmem_budget_bytes()
    Bt = _pick_batch_block(B, H, W, budget)
    kernel = functools.partial(_verlet_energy_kernel,
                               dx=dx, dt=dt, nt=nt, H=H, W=W, Bt=Bt)

    plane_spec = pl.BlockSpec((Bt, H, W), lambda i: (i, 0, 0))
    # Read vel directly from restr_output channel 3 (squeezed channel dim).
    vel_spec = pl.BlockSpec((Bt, None, H, W), lambda i: (i, 3, 0, 0))
    # Output block covers only channels 0..2; channel 3 survives untouched via
    # the input/output alias (restr_output -> output).
    out_spec = pl.BlockSpec((Bt, 3, H, W), lambda i: (i, 0, 0, 0))

    plane_bytes = H * W * 4
    vmem_need = Bt * plane_bytes * ((3 + 3) * 2 + 8)
    vmem_limit = int(min(budget, max(32 * 2 ** 20, 2 * vmem_need)))

    return pl.pallas_call(
        kernel,
        out_shape=jax.ShapeDtypeStruct((B, 4, H, W), jnp.float32),
        grid_spec=pltpu.PrefetchScalarGridSpec(
            num_scalar_prefetch=0,
            grid=(B // Bt,),
            in_specs=[plane_spec, plane_spec, vel_spec],
            out_specs=out_spec,
        ),
        input_output_aliases={2: 0},   # restr_output aliased to the output
        compiler_params=pltpu.CompilerParams(
            dimension_semantics=("parallel",),
            vmem_limit_bytes=vmem_limit,
        ),
    )(u0, ut0, restr_output)


# -----------------------------------------------------------------------------
# Plain-JAX glue: WaveSol_from_EnergyComponent (FFT-based inverse gradient)
# -----------------------------------------------------------------------------
def _grad2func(vx, vy, dx, sumv):
    """Inverse of the gradient operator via FFT (DC component set to sumv)."""
    # TODO(synk): FFT has no Pallas equivalent; this reconstruction stays in JAX.
    _, ny, nx = vx.shape
    hatx = jnp.fft.fft2(vx)
    haty = jnp.fft.fft2(vy)
    xii = 2.0 * np.pi / (dx * nx) * np.fft.ifftshift(
        np.linspace(-round(nx / 2), round(nx / 2 - 1), nx))
    yii = 2.0 * np.pi / (dx * ny) * np.fft.ifftshift(
        np.linspace(-round(ny / 2), round(ny / 2 - 1), ny))
    yiyi, xixi = np.meshgrid(xii, yii)            # (ny, nx); xixi varies along H
    radsq = xixi * xixi + yiyi * yiyi
    radsq[0, 0] = 1.0
    xixi = jnp.asarray(xixi, jnp.float32)
    yiyi = jnp.asarray(yiyi, jnp.float32)
    radsq = jnp.asarray(radsq, jnp.float32)
    hatv = -1j * (hatx * xixi + haty * yiyi) / radsq
    hatv = hatv.at[:, 0, 0].set(sumv.astype(hatv.dtype))
    return jnp.real(jnp.fft.ifft2(hatv)).astype(jnp.float32)


def _wave_sol_from_energy_component(wx, wy, wtc, c, dx, sumv):
    u = _grad2func(wx, wy, dx, sumv)
    ut = wtc * c
    return u, ut


# -----------------------------------------------------------------------------
# Module wrapper (mirrors Numerical_solver.forward)
# -----------------------------------------------------------------------------
class NumericalSolver:
    def __init__(self, boundary_condition, c_delta_x, c_delta_t, delta_t_star):
        if boundary_condition != "periodic":
            # TODO(synk): "absorbing" boundary-condition branch of velocity_verlet
            # is not implemented; only the periodic scheme is translated.
            raise NotImplementedError("only 'periodic' boundary condition supported")
        self.boundary_condition = boundary_condition
        self.c_delta_x = float(c_delta_x)
        self.c_delta_t = float(c_delta_t)
        self.delta_t_star = float(delta_t_star)

    def __call__(self, restr_output):
        # restr_output: (B, 4, H, W) float32, channels = [wx, wy, wtc, vel]
        restr_output = restr_output.astype(jnp.float32)
        wx_in = restr_output[:, 0, :, :]
        wy_in = restr_output[:, 1, :, :]
        wtc_in = restr_output[:, 2, :, :]
        vel_c = restr_output[:, 3, :, :]

        sumv = jnp.sum(wx_in)   # torch.sum(torch.sum(restr_output[:, 0]))
        u0, ut0 = _wave_sol_from_energy_component(
            wx_in, wy_in, wtc_in, vel_c, self.c_delta_x, sumv)

        nt = int(round(abs(self.delta_t_star / self.c_delta_t)))
        # The Pallas kernel writes channels 0..2 (wx, wy, wtc); channel 3 (vel)
        # passes through via the restr_output -> output alias, so its output IS
        # the module output (no post-kernel stack / extra HBM traffic).
        return _verlet_energy_pallas(
            u0, ut0, restr_output, dx=self.c_delta_x, dt=self.c_delta_t, nt=nt)


# -----------------------------------------------------------------------------
# Demo
# -----------------------------------------------------------------------------
if __name__ == "__main__":
    key = jax.random.PRNGKey(0)
    B, C, H, W = 2, 4, 16, 16
    k1, k2, k3, k4 = jax.random.split(key, 4)

    wx0 = 0.1 * jax.random.normal(k1, (B, H, W), jnp.float32)
    wy0 = 0.1 * jax.random.normal(k2, (B, H, W), jnp.float32)
    wtc0 = 0.1 * jax.random.normal(k3, (B, H, W), jnp.float32)
    vel = 1.0 + 0.2 * jax.random.uniform(k4, (B, H, W), jnp.float32)  # strictly positive
    restr_output = jnp.stack((wx0, wy0, wtc0, vel), axis=1)           # (B, 4, H, W)

    solver = NumericalSolver(boundary_condition="periodic",
                             c_delta_x=2.0 / W,        # domain [-1, 1]
                             c_delta_t=1.0 / 128.0,
                             delta_t_star=3.0 / 128.0)  # -> 3 Verlet steps

    out = solver(restr_output)
    out = jax.block_until_ready(out)

    assert out.shape == (B, 4, H, W), out.shape
    assert out.dtype == jnp.float32
    assert bool(jnp.all(jnp.isfinite(out)))
    # vel channel must survive the input->output alias untouched
    assert bool(jnp.allclose(out[:, 3, :, :], vel))
    print("KERNEL_OK")
</pallas_src>

<mosaic_0001>
module attributes {stable_mosaic.version = 11 : i64} {
  func.func @_verlet_energy_kernel(%arg0: i32, %arg1: memref<1x16x16xf32, #tpu.memory_space<vmem>>, %arg2: memref<1x16x16xf32, #tpu.memory_space<vmem>>, %arg3: memref<1x1x16x16xf32, #tpu.memory_space<vmem>>, %arg4: memref<1x3x16x16xf32, #tpu.memory_space<vmem>>) attributes {dimension_semantics = [#tpu.dimension_semantics<parallel>], iteration_bounds = array<i64: 2>, scalar_prefetch = 0 : i64, scratch_operands = 0 : i64, tpu.core_type = #tpu.core_type<tc>, window_params = [{transform_indices = @transform_0, window_bounds = array<i64: 1, 16, 16>}, {transform_indices = @transform_1, window_bounds = array<i64: 1, 16, 16>}, {transform_indices = @transform_2, window_bounds = array<i64: 1, 1, 16, 16>}, {transform_indices = @transform_3, window_bounds = array<i64: 1, 3, 16, 16>}]} {
    %0 = tpu.iota {dimensions = array<i32: 0>} : vector<16x16xi32>
    %c0_i32 = arith.constant 0 : i32
    %1 = vector.broadcast %c0_i32 : i32 to vector<16x16xi32>
    %2 = arith.cmpi eq, %0, %1 : vector<16x16xi32>
    %3 = tpu.iota {dimensions = array<i32: 1>} : vector<16x16xi32>
    %c0_i32_0 = arith.constant 0 : i32
    %4 = vector.broadcast %c0_i32_0 : i32 to vector<16x16xi32>
    %5 = arith.cmpi eq, %3, %4 : vector<16x16xi32>
    %c0 = arith.constant 0 : index
    %c0_1 = arith.constant 0 : index
    %c0_2 = arith.constant 0 : index
    %6 = vector.load %arg1[%c0, %c0_1, %c0_2] : memref<1x16x16xf32, #tpu.memory_space<vmem>>, vector<1x16x16xf32>
    %7 = vector.shape_cast %6 : vector<1x16x16xf32> to vector<16x16xf32>
    %c0_3 = arith.constant 0 : index
    %c0_4 = arith.constant 0 : index
    %c0_5 = arith.constant 0 : index
    %8 = vector.load %arg2[%c0_3, %c0_4, %c0_5] : memref<1x16x16xf32, #tpu.memory_space<vmem>>, vector<1x16x16xf32>
    %9 = vector.shape_cast %8 : vector<1x16x16xf32> to vector<16x16xf32>
    %c0_6 = arith.constant 0 : index
    %c0_7 = arith.constant 0 : index
    %c0_8 = arith.constant 0 : index
    %c0_9 = arith.constant 0 : index
    %10 = vector.load %arg3[%c0_6, %c0_7, %c0_8, %c0_9] : memref<1x1x16x16xf32, #tpu.memory_space<vmem>>, vector<1x1x16x16xf32>
    %11 = vector.shape_cast %10 : vector<1x1x16x16xf32> to vector<16x16xf32>
    %12 = arith.mulf %11, %11 : vector<16x16xf32>
    %cst = arith.constant 6.400000e+01 : f32
    %13 = vector.broadcast %cst : f32 to vector<16x16xf32>
    %14 = arith.mulf %12, %13 : vector<16x16xf32>
    %cst_10 = arith.constant 3.05175781E-5 : f32
    %15 = vector.broadcast %cst_10 : f32 to vector<16x16xf32>
    %16 = arith.mulf %15, %14 : vector<16x16xf32>
    %cst_11 = arith.constant 3.906250e-03 : f32
    %17 = vector.broadcast %cst_11 : f32 to vector<16x16xf32>
    %18 = arith.mulf %17, %14 : vector<16x16xf32>
    %c1_i32 = arith.constant 1 : i32
    %19 = tpu.dynamic_rotate %7 by %c1_i32 dim 0 : vector<16x16xf32>, i32 -> vector<16x16xf32>
    %c15_i32 = arith.constant 15 : i32
    %20 = tpu.dynamic_rotate %7 by %c15_i32 dim 0 : vector<16x16xf32>, i32 -> vector<16x16xf32>
    %c1_i32_12 = arith.constant 1 : i32
    %21 = tpu.dynamic_rotate %7 by %c1_i32_12 dim 1 : vector<16x16xf32>, i32 -> vector<16x16xf32>
    %c15_i32_13 = arith.constant 15 : i32
    %22 = tpu.dynamic_rotate %7 by %c15_i32_13 dim 1 : vector<16x16xf32>, i32 -> vector<16x16xf32>
    %23 = arith.addf %19, %20 : vector<16x16xf32>
    %24 = arith.addf %21, %22 : vector<16x16xf32>
    %25 = arith.addf %23, %24 : vector<16x16xf32>
    %cst_14 = arith.constant 4.000000e+00 : f32
    %26 = vector.broadcast %cst_14 : f32 to vector<16x16xf32>
    %27 = arith.mulf %26, %7 : vector<16x16xf32>
    %28 = arith.subf %25, %27 : vector<16x16xf32>
    %cst_15 = arith.constant 7.812500e-03 : f32
    %29 = vector.broadcast %cst_15 : f32 to vector<16x16xf32>
    %30 = arith.mulf %29, %9 : vector<16x16xf32>
    %31 = arith.addf %7, %30 : vector<16x16xf32>
    %32 = arith.mulf %16, %28 : vector<16x16xf32>
    %33 = arith.addf %31, %32 : vector<16x16xf32>
    %c1_i32_16 = arith.constant 1 : i32
    %34 = tpu.dynamic_rotate %33 by %c1_i32_16 dim 0 : vector<16x16xf32>, i32 -> vector<16x16xf32>
    %c15_i32_17 = arith.constant 15 : i32
    %35 = tpu.dynamic_rotate %33 by %c15_i32_17 dim 0 : vector<16x16xf32>, i32 -> vector<16x16xf32>
    %c1_i32_18 = arith.constant 1 : i32
    %36 = tpu.dynamic_rotate %33 by %c1_i32_18 dim 1 : vector<16x16xf32>, i32 -> vector<16x16xf32>
    %c15_i32_19 = arith.constant 15 : i32
    %37 = tpu.dynamic_rotate %33 by %c15_i32_19 dim 1 : vector<16x16xf32>, i32 -> vector<16x16xf32>
    %38 = arith.addf %34, %35 : vector<16x16xf32>
    %39 = arith.addf %36, %37 : vector<16x16xf32>
    %40 = arith.addf %38, %39 : vector<16x16xf32>
    %cst_20 = arith.constant 4.000000e+00 : f32
    %41 = vector.broadcast %cst_20 : f32 to vector<16x16xf32>
    %42 = arith.mulf %41, %33 : vector<16x16xf32>
    %43 = arith.subf %40, %42 : vector<16x16xf32>
    %44 = arith.addf %28, %43 : vector<16x16xf32>
    %45 = arith.mulf %18, %44 : vector<16x16xf32>
    %46 = arith.addf %9, %45 : vector<16x16xf32>
    %cst_21 = arith.constant 7.812500e-03 : f32
    %47 = vector.broadcast %cst_21 : f32 to vector<16x16xf32>
    %48 = arith.mulf %47, %46 : vector<16x16xf32>
    %49 = arith.addf %33, %48 : vector<16x16xf32>
    %50 = arith.mulf %16, %43 : vector<16x16xf32>
    %51 = arith.addf %49, %50 : vector<16x16xf32>
    %c1_i32_22 = arith.constant 1 : i32
    %52 = tpu.dynamic_rotate %51 by %c1_i32_22 dim 0 : vector<16x16xf32>, i32 -> vector<16x16xf32>
    %c15_i32_23 = arith.constant 15 : i32
    %53 = tpu.dynamic_rotate %51 by %c15_i32_23 dim 0 : vector<16x16xf32>, i32 -> vector<16x16xf32>
    %c1_i32_24 = arith.constant 1 : i32
    %54 = tpu.dynamic_rotate %51 by %c1_i32_24 dim 1 : vector<16x16xf32>, i32 -> vector<16x16xf32>
    %c15_i32_25 = arith.constant 15 : i32
    %55 = tpu.dynamic_rotate %51 by %c15_i32_25 dim 1 : vector<16x16xf32>, i32 -> vector<16x16xf32>
    %56 = arith.addf %52, %53 : vector<16x16xf32>
    %57 = arith.addf %54, %55 : vector<16x16xf32>
    %58 = arith.addf %56, %57 : vector<16x16xf32>
    %cst_26 = arith.constant 4.000000e+00 : f32
    %59 = vector.broadcast %cst_26 : f32 to vector<16x16xf32>
    %60 = arith.mulf %59, %51 : vector<16x16xf32>
    %61 = arith.subf %58, %60 : vector<16x16xf32>
    %62 = arith.addf %43, %61 : vector<16x16xf32>
    %63 = arith.mulf %18, %62 : vector<16x16xf32>
    %64 = arith.addf %46, %63 : vector<16x16xf32>
    %cst_27 = arith.constant 7.812500e-03 : f32
    %65 = vector.broadcast %cst_27 : f32 to vector<16x16xf32>
    %66 = arith.mulf %65, %64 : vector<16x16xf32>
    %67 = arith.addf %51, %66 : vector<16x16xf32>
    %68 = arith.mulf %16, %61 : vector<16x16xf32>
    %69 = arith.addf %67, %68 : vector<16x16xf32>
    %c1_i32_28 = arith.constant 1 : i32
    %70 = tpu.dynamic_rotate %69 by %c1_i32_28 dim 0 : vector<16x16xf32>, i32 -> vector<16x16xf32>
    %c15_i32_29 = arith.constant 15 : i32
    %71 = tpu.dynamic_rotate %69 by %c15_i32_29 dim 0 : vector<16x16xf32>, i32 -> vector<16x16xf32>
    %c1_i32_30 = arith.constant 1 : i32
    %72 = tpu.dynamic_rotate %69 by %c1_i32_30 dim 1 : vector<16x16xf32>, i32 -> vector<16x16xf32>
    %c15_i32_31 = arith.constant 15 : i32
    %73 = tpu.dynamic_rotate %69 by %c15_i32_31 dim 1 : vector<16x16xf32>, i32 -> vector<16x16xf32>
    %74 = arith.addf %70, %71 : vector<16x16xf32>
    %75 = arith.addf %72, %73 : vector<16x16xf32>
    %76 = arith.addf %74, %75 : vector<16x16xf32>
    %cst_32 = arith.constant 4.000000e+00 : f32
    %77 = vector.broadcast %cst_32 : f32 to vector<16x16xf32>
    %78 = arith.mulf %77, %69 : vector<16x16xf32>
    %79 = arith.subf %76, %78 : vector<16x16xf32>
    %80 = arith.addf %61, %79 : vector<16x16xf32>
    %81 = arith.mulf %18, %80 : vector<16x16xf32>
    %82 = arith.addf %64, %81 : vector<16x16xf32>
    %83 = arith.subf %69, %70 : vector<16x16xf32>
    %cst_33 = arith.constant 8.000000e+00 : f32
    %84 = vector.broadcast %cst_33 : f32 to vector<16x16xf32>
    %85 = arith.mulf %83, %84 : vector<16x16xf32>
    %cst_34 = arith.constant 0.000000e+00 : f32
    %86 = vector.broadcast %cst_34 : f32 to vector<16x16xf32>
    %87 = arith.select %2, %86, %85 : vector<16x16xi1>, vector<16x16xf32>
    %88 = arith.subf %69, %72 : vector<16x16xf32>
    %cst_35 = arith.constant 8.000000e+00 : f32
    %89 = vector.broadcast %cst_35 : f32 to vector<16x16xf32>
    %90 = arith.mulf %88, %89 : vector<16x16xf32>
    %cst_36 = arith.constant 0.000000e+00 : f32
    %91 = vector.broadcast %cst_36 : f32 to vector<16x16xf32>
    %92 = arith.select %5, %91, %90 : vector<16x16xi1>, vector<16x16xf32>
    %93 = tpu.reciprocal %11 : vector<16x16xf32> -> vector<16x16xf32>
    %94 = arith.mulf %82, %93 : vector<16x16xf32>
    %c0_37 = arith.constant 0 : index
    %c0_38 = arith.constant 0 : index
    %c0_39 = arith.constant 0 : index
    %c0_40 = arith.constant 0 : index
    %95 = vector.load %arg4[%c0_37, %c0_38, %c0_39, %c0_40] : memref<1x3x16x16xf32, #tpu.memory_space<vmem>>, vector<1x1x16x16xf32>
    %96 = vector.shape_cast %95 : vector<1x1x16x16xf32> to vector<16x16xf32>
    %97 = vector.shape_cast %87 : vector<16x16xf32> to vector<1x1x16x16xf32>
    tpu.vector_store %arg4[%c0_37, %c0_38, %c0_39, %c0_40], %97 {strides = array<i32>} : memref<1x3x16x16xf32, #tpu.memory_space<vmem>>, vector<1x1x16x16xf32>,
    %c0_41 = arith.constant 0 : index
    %c1 = arith.constant 1 : index
    %c0_42 = arith.constant 0 : index
    %c0_43 = arith.constant 0 : index
    %98 = vector.load %arg4[%c0_41, %c1, %c0_42, %c0_43] : memref<1x3x16x16xf32, #tpu.memory_space<vmem>>, vector<1x1x16x16xf32>
    %99 = vector.shape_cast %98 : vector<1x1x16x16xf32> to vector<16x16xf32>
    %100 = vector.shape_cast %92 : vector<16x16xf32> to vector<1x1x16x16xf32>
    tpu.vector_store %arg4[%c0_41, %c1, %c0_42, %c0_43], %100 {strides = array<i32>} : memref<1x3x16x16xf32, #tpu.memory_space<vmem>>, vector<1x1x16x16xf32>,
    %c0_44 = arith.constant 0 : index
    %c2 = arith.constant 2 : index
    %c0_45 = arith.constant 0 : index
    %c0_46 = arith.constant 0 : index
    %101 = vector.load %arg4[%c0_44, %c2, %c0_45, %c0_46] : memref<1x3x16x16xf32, #tpu.memory_space<vmem>>, vector<1x1x16x16xf32>
    %102 = vector.shape_cast %101 : vector<1x1x16x16xf32> to vector<16x16xf32>
    %103 = vector.shape_cast %94 : vector<16x16xf32> to vector<1x1x16x16xf32>
    tpu.vector_store %arg4[%c0_44, %c2, %c0_45, %c0_46], %103 {strides = array<i32>} : memref<1x3x16x16xf32, #tpu.memory_space<vmem>>, vector<1x1x16x16xf32>,
    return
  }
  func.func @transform_0(%arg0: i32) -> (i32, i32, i32) {
    %c0_i32 = arith.constant 0 : i32
    %c0_i32_0 = arith.constant 0 : i32
    %c0_i32_1 = arith.constant 0 : i32
    return %arg0, %c0_i32, %c0_i32_0 : i32, i32, i32
  }
  func.func @transform_1(%arg0: i32) -> (i32, i32, i32) {
    %c0_i32 = arith.constant 0 : i32
    %c0_i32_0 = arith.constant 0 : i32
    %c0_i32_1 = arith.constant 0 : i32
    return %arg0, %c0_i32, %c0_i32_0 : i32, i32, i32
  }
  func.func @transform_2(%arg0: i32) -> (i32, i32, i32, i32) {
    %c3_i32 = arith.constant 3 : i32
    %c0_i32 = arith.constant 0 : i32
    %c0_i32_0 = arith.constant 0 : i32
    %c0_i32_1 = arith.constant 0 : i32
    return %arg0, %c3_i32, %c0_i32, %c0_i32_0 : i32, i32, i32, i32
  }
  func.func @transform_3(%arg0: i32) -> (i32, i32, i32, i32) {
    %c0_i32 = arith.constant 0 : i32
    %c0_i32_0 = arith.constant 0 : i32
    %c0_i32_1 = arith.constant 0 : i32
    %c0_i32_2 = arith.constant 0 : i32
    return %arg0, %c0_i32, %c0_i32_0, %c0_i32_1 : i32, i32, i32, i32
  }
}

</mosaic_0001>

<bundles_post_ra>
// kernel: tpu_custom_call.1
= control target key start
LH: loop header
LB: loop body
LE: loop exit
PB: predicated region body
PF: predicated region fallthrough
CT: control target
= control target key end

     0   :  { %8 = vsyncpa [#allocation3], 0  ;;  %s1188_s0 = inlined_call_operand.vmem [shape: f32[2,16,16], index: 0, kind: input, shape index: {}]   ;;  %s1189_s1 = inlined_call_operand.vmem [shape: f32[2,16,16], index: 1, kind: input, shape index: {}]   ;;  %s1190_s2 = inlined_call_operand.hbm [shape: f32[2,4,16,16], index: 2, kind: input, shape index: {}, may-alias: {2,3}]   ;;  %s1191_s3 = inlined_call_operand.hbm [shape: f32[2,4,16,16], index: 3, kind: output, shape index: {}, may-alias: {2,3}]  }
   0x1   :  { %10 = vsyncpa [#allocation3 + $0x1], 0 }
   0x2   :  { %11 = vsyncpa [#allocation4], 0 }
   0x3   :  { %13 = vsyncpa [#allocation4 + $0x1], 0  ;;  %s831_s12 = smov 0   ;;  %s833_s13 = smov 0  }
   0x4   :  { %s835_s14 = smov 0   ;;  %s837_s15 = smov 0  }
   0x5 LB: > { %s852_s16 = sadd.s32 4294967295, %s800_s15   ;;  %s625_s17 = sadd.s32 4294967294, %s800_s15   ;;  %s800_s15 = sphi %s837_s15, %s1207_s15   ;;  %s796_s14 = sphi %s835_s14, %s1206_s14   ;;  %s792_s13 = sphi %s833_s13, %s1205_s13   ;;  %s788_s12 = sphi %s831_s12, %s1204_s12  }
   0x6   : > { %s856_s18 = sadd.s32 1, %s800_s15   ;;  %s78_s19 = sadd.s32 1, %s796_s14 }
   0x7   : > { %s75_s20 = ssub.s32 %s800_s15, %s856_s18  ;;  %p85_p0 = scmp.ne.s32.totalorder %s796_s14, %s792_s13 }
   0x8   : > { %p76_p1 = scmp.eq.s32.totalorder %s75_s20, 0  ;;  %p86_p2 = scmp.eq.s32.totalorder %s800_s15, 0 }
   0x9   : > { %p91_p3 = scmp.ne.s32.totalorder %s792_s13, %s788_s12  ;;  %p92_p4 = scmp.eq.s32.totalorder %s852_s16, 0 }
   0xa   : > { %s868_s21 = scalar_select %p76_p1, %s796_s14, %s78_s19  }
   0xb   : > { %p870_p5 = por %p86_p2, %p85_p0  ;;  %p874_p6 = por %p92_p4, %p91_p3 }
   0xc   : > { %p115_p7 = scmp.eq.s32.totalorder %s852_s16, 1  ;;  %p121_p8 = scmp.eq.s32.totalorder %s625_s17, 1 }
   0xd   : > { %s1195_s23 = scalar_select %p874_p6, 1, 0 }
   0xe   : > { %p662_p10 = scmp.lt.s32.totalorder %s800_s15, 2  ;;  %p881_p11 = por %p115_p7, %p85_p0 }
   0xf   : > { %p885_p12 = por %p121_p8, %p91_p3  ;;  %s157_s26 = sand.u32 1, %s796_s14  }
  0x10   : > { %s1196_s24 = scalar_select %p881_p11, 1, 0 }
  0x11   : > { %s1197_s25 = scalar_select %p885_p12, 1, 0 }
  0x12   : > { %s645_s27 = sshll.u32 %s800_s15, 10  ;;  %s628_s28 = sshll.u32 %s157_s26, 4 }
  0x13   : > { %s562_s4 = scalar_lea.hbm %s1190_s2, %s645_s27  ;;  %s161_s6 = scalar_lea.vmem [#allocation2], %s628_s28 }
  0x14   : > { %s894_s5 = scalar_lea.hbm %s562_s4, 768  ;;  %s169_s7 = sshll.u32 %s161_s6, 4  ;;  %s896_s7 = int_to_ptr.vmem [resolvable:$true] %s169_s7 }
  0x15   : > { %p900_p13 = pnand %p662_p10, %p870_p5  ;;  %s905_s9 = scalar_lea.sflag [#allocation3], %s157_s26 }
  0x16   : > { %s735_s10 = scalar_lea.hbm %s562_s4, 1024  ;;  %s712_s19 = scalar_lea.hbm %s1190_s2, 2048 }
  0x17   : > { %p708_p1 = scmp.ne.s32.totalorder %s894_s5, %s735_s10  ;;  %p709_p2 = pneg %p900_p13 }
  0x18   : > { %p713_p5 = scmp.lt.s32.totalorder %s894_s5, %s1190_s2  ;;  %p714_p7 = scmp.lt.s32.totalorder %s712_s19, %s735_s10 }
  0x19   : > { %p710_p3 = pnand %p709_p2, %p708_p1 }
  0x1a   : > { %p715_p8 = por %p714_p7, %p713_p5 }
  0x1b   : > { %p711_p4 = pneg %p710_p3 }
  0x1d   : > { %p716_p10 = pnand %p715_p8, %p711_p4 }
  0x1f   : > { %719 = shalt.err (!%p716_p10)
}
  0x20   : > { %s720_s26 = scalar_lea.vmem %s896_s7, 256  ;;  %s802_s27 = smov [#allocation2]  }
  0x21   : > { %p721_p9 = scmp.ne.s32.totalorder %s896_s7, %s720_s26  ;;  %s725_s28 = sshll.u32 %s802_s27, 4  ;;  %s726_s28 = int_to_ptr.vmem [resolvable:$false] %s725_s28 }
  0x22   : > { %s727_s29 = scalar_lea.vmem %s726_s28, 512  ;;  %p728_p3 = scmp.lt.s32.totalorder %s896_s7, %s726_s28 }
  0x23   : > { %p723_p0 = pnand %p721_p9, %p709_p2  ;;  %p729_p12 = scmp.lt.s32.totalorder %s727_s29, %s720_s26 }
  0x25   : > { %p724_p1 = pneg %p723_p0  ;;  %p730_p11 = por %p729_p12, %p728_p3 }
  0x27   : > { %p731_p6 = pnand %p730_p11, %p724_p1 }
  0x29   : > { %734 = shalt.err (!%p731_p6)
}
  0x2a   : > { %s803_s30 = smov 128   ;;  %s804_s4 = smov 8  }
  0x2b   : > { %657 = dma.hbm_to_vmem [thread:$0]  (!%p900_p13), %s894_s5, 256, %s896_s7, %s905_s9, %s803_s30, %s803_s30, %s804_s4  }
  0x2c   : > { %p177_p9 = scmp.lt.s32.totalorder %s800_s15, 3  ;;  %p1199_p0 = scmp.ge.s32.totalorder %s800_s15, 1 }
  0x2e   : > { %p178_p2 = pnand %p1199_p0, %p177_p9 }
  0x2f   : > { %s929_s6 = sand.u32 (!%p178_p2), 1, %s792_s13   ;;  %p1200_p6 = scmp.ne.s32.totalorder (!%p178_p2), %s1195_s23, 0 }
  0x30   : > { %181 = sbr.rel (%p178_p2) target bundleno = 1987 (0x7c3), region = 32  ;;  %s632_s10 = sshll.u32 (!%p178_p2), %s929_s6, 4 }
  0x31   : > { %s184_s11 = scalar_lea.sflag (!%p178_p2), [#allocation3], %s929_s6  ;;  %s933_s17 = scalar_lea.vmem (!%p178_p2), [#allocation2], %s632_s10 }
  0x35   : > { %779 = dma.done.wait (%p1200_p6), %s184_s11, 256  }
  0x36   : > { %781 = vsyncadd (%p1200_p6), %s184_s11, 4294967040  ;;  %p220_p11 = scmp.lt.s32.totalorder %s852_s16, 1  ;;  %s805_s20 = smov 16   ;;  %vm262_vm0 = vcmask 1047680   ;;  %v230_v14 = vlaneseq  ;;  %v965_v16 = vld [vmem:[%s933_s17] sm:$0xff]  ;;  %v981_v24 = vld [vmem:[%s933_s17 + $0x8] sm:$0xff] }
  0x37   : > { %s806_s23 = smov 14   ;;  %s807_s22 = smov 113   ;;  %v244_v21 = vmul.f32 %v965_v16, %v965_v16  ;;  %v245_v28 = vmul.f32 %v981_v24, %v981_v24  ;;  %vm503_vm4 = vcmask 130048   ;;  %703 = vrcp.f32 %v965_v16 }
  0x38   : > { %s941_s5 = scalar_select %p220_p11, %s852_s16, 1  ;;  %v962_v15 = vshrl.u32 %v230_v14, 7  ;;  %705 = vrcp.f32 %v981_v24 }
  0x39   : > { %v246_v26 = vmul.f32 64.0, %v244_v21  ;;  %v247_v37 = vmul.f32 64.0, %v245_v28  ;;  %s649_s29 = smul.u32 48, %s929_s6  ;;  %s648_s10 = sshll.u32 %s852_s16, 10 }
  0x3a   : > { %s646_s7 = sshll.u32 %s941_s5, 4  ;;  %vm254_vm1 = vcmp.lt.s32.totalorder %v962_v15, 1  ;;  %vm259_vm2 = vcmp.lt.s32.totalorder %v962_v15, 7  ;;  %vm233_vm3 = vcmp.eq.s32.totalorder %v962_v15, 0  ;;  %s1141_s5 = scalar_lea.hbm %s1191_s3, %s648_s10 }
  0x3b   : > { %s224_s19 = scalar_lea.vmem %s1188_s0, %s646_s7  ;;  %s229_s28 = scalar_lea.vmem %s1189_s1, %s646_s7  ;;  %v994_v35 = vmul.f32 3.0517578e-05, %v246_v26  ;;  %v998_v45 = vmul.f32 3.0517578e-05, %v247_v37 }
  0x3c   : > { %v238_v0 = vld [vmem:[%s224_s19] sm:$0xff]  ;;  %v239_v1 = vld [vmem:[%s224_s19 + $0x8] sm:$0xff]  ;;  %s1087_s30 = scalar_lea.vmem [#allocation5], %s649_s29  ;;  %s513_s16 = scalar_lea.sflag [#allocation4], %s929_s6 }
  0x3d   : > { %263 = vrot.lane.b32.xlu0 %v238_v0, %s805_s20  ;;  %v253_v17 = vrot.slane %v239_v1, 7  ;;  %v258_v18 = vrot.slane %v239_v1, 1  ;;  %v252_v19 = vrot.slane %v238_v0, 7  ;;  %v257_v20 = vrot.slane %v238_v0, 1  ;;  %v983_v25 = vld [vmem:[%s229_s28] sm:$0xff]  ;;  %v992_v34 = vld [vmem:[%s229_s28 + $0x8] sm:$0xff] }
  0x3e   : > { %v301_v31 = vmul.f32 0.0078125, %v983_v25  ;;  %v297_v32 = vmul.f32 4.0, %v238_v0  ;;  %v298_v41 = vmul.f32 4.0, %v239_v1  ;;  %v302_v42 = vmul.f32 0.0078125, %v992_v34  ;;  %s526_s4 = sshll.u32 %s1087_s30, 4  ;;  %p1201_p13 = scmp.ne.s32.totalorder %s1196_s24, 0  ;;  %s1143_s4 = int_to_ptr.vmem [resolvable:$true] %s526_s4 }
  0x3f   : > { %v256_v22 = vsel %vm254_vm1, %v253_v17, %v252_v19  ;;  %v260_v23 = vsel %vm259_vm2, %v257_v20, %v258_v18  ;;  %v255_v29 = vsel %vm254_vm1, %v252_v19, %v253_v17  ;;  %v261_v30 = vsel %vm259_vm2, %v258_v18, %v257_v20  ;;  %s736_s7 = scalar_lea.vmem %s1143_s4, 768  ;;  %s808_s8 = smov [#allocation5]  }
  0x40   : > { %v275_v27 = vadd.f32 %v260_v23, %v256_v22  ;;  %v276_v38 = vadd.f32 %v261_v30, %v255_v29  ;;  %v303_v40 = vadd.f32 %v301_v31, %v238_v0  ;;  %v304_v48 = vadd.f32 %v302_v42, %v239_v1  ;;  %p737_p12 = scmp.ne.s32.totalorder %s1143_s4, %s736_s7  ;;  %s740_s9 = sshll.u32 %s808_s8, 4  ;;  %s741_s9 = int_to_ptr.vmem [resolvable:$false] %s740_s9 }
  0x41   : > { %266 = vrot.lane.b32.xlu0 %v239_v1, %s805_s20  ;;  %v1023_v22 = vmul.f32 0.00390625, %v247_v37  ;;  %s742_s19 = scalar_lea.vmem %s741_s9, 1536  ;;  %p743_p7 = scmp.lt.s32.totalorder %s1143_s4, %s741_s9 }
  0x42   : > { %p738_p4 = pnand %p737_p12, %p1201_p13  ;;  %p744_p8 = scmp.lt.s32.totalorder %s742_s19, %s736_s7 }
  0x44   : > { %p739_p5 = pneg %p738_p4  ;;  %p745_p10 = por %p744_p8, %p743_p7 }
  0x46   : > { %p746_p1 = pnand %p745_p10, %p739_p5 }
  0xaf   : > { %v264_v2 = vpop.permute.xlu0 %263 }
  0xb0   : > { %v265_v3 = vsel %vm262_vm0, %v264_v2, %v238_v0 }
  0xb1   : > { %269 = vrot.lane.b32.xlu1 %v265_v3, %s805_s20 }
  0xb3   : > { %v267_v4 = vpop.permute.xlu0 %266 }
  0xb4   : > { %v268_v5 = vsel %vm262_vm0, %v267_v4, %v239_v1 }
  0xb5   : > { %271 = vrot.lane.b32.xlu1 %v268_v5, %s805_s20 }
 0x123   : > { %v270_v6 = vpop.permute.xlu1 %269 }
 0x124   : > { %v273_v7 = vsel %vm262_vm0, %v270_v6, %v238_v0 }
 0x125   : > { %279 = vrot.lane.b32.xlu0 %v273_v7, %s806_s23 }
 0x127   : > { %v272_v8 = vpop.permute.xlu1 %271 }
 0x128   : > { %v274_v9 = vsel %vm262_vm0, %v272_v8, %v239_v1 }
 0x129   : > { %281 = vrot.lane.b32.xlu1 %v274_v9, %s806_s23 }
 0x197   : > { %v280_v10 = vpop.permute.xlu0 %279 }
 0x198   : > { %v285_v11 = vadd.f32 %v280_v10, %v273_v7 }
 0x19a   : > { %289 = vrot.lane.b32.xlu0 %v285_v11, %s807_s22 }
 0x19b   : > { %v282_v12 = vpop.permute.xlu1 %281 }
 0x19c   : > { %v286_v13 = vadd.f32 %v282_v12, %v274_v9  ;;  %v1021_v12 = vmul.f32 0.00390625, %v246_v26 }
 0x19e   : > { %291 = vrot.lane.b32.xlu1 %v286_v13, %s807_s22 }
 0x20c   : > { %v290_v33 = vpop.permute.xlu0 %289 }
 0x20d   : > { %v295_v36 = vadd.f32 %v290_v33, %v275_v27 }
 0x20f   : > { %v299_v39 = vsub.f32 %v295_v36, %v297_v32 }
 0x210   : > { %v292_v43 = vpop.permute.xlu1 %291 }
 0x211   : > { %v305_v44 = vmul.f32 %v299_v39, %v994_v35  ;;  %v296_v46 = vadd.f32 %v292_v43, %v276_v38 }
 0x213   : > { %v307_v47 = vadd.f32 %v305_v44, %v303_v40  ;;  %v300_v49 = vsub.f32 %v296_v46, %v298_v41 }
 0x215   : > { %v306_v50 = vmul.f32 %v300_v49, %v998_v45  ;;  %317 = vrot.lane.b32.xlu0 %v307_v47, %s805_s20  ;;  %v309_v2 = vrot.slane %v307_v47, 7  ;;  %v313_v3 = vrot.slane %v307_v47, 1  ;;  %v351_v11 = vmul.f32 4.0, %v307_v47 }
 0x217   : > { %v308_v51 = vadd.f32 %v306_v50, %v304_v48 }
 0x219   : > { %320 = vrot.lane.b32.xlu1 %v308_v51, %s805_s20  ;;  %v310_v0 = vrot.slane %v308_v51, 7  ;;  %v314_v1 = vrot.slane %v308_v51, 1  ;;  %v352_v21 = vmul.f32 4.0, %v308_v51 }
 0x21b   : > { %v312_v4 = vsel %vm254_vm1, %v310_v0, %v309_v2  ;;  %v315_v5 = vsel %vm259_vm2, %v313_v3, %v314_v1  ;;  %v311_v8 = vsel %vm254_vm1, %v309_v2, %v310_v0  ;;  %v316_v9 = vsel %vm259_vm2, %v314_v1, %v313_v3 }
 0x21c   : > { %v329_v6 = vadd.f32 %v315_v5, %v312_v4  ;;  %v330_v17 = vadd.f32 %v316_v9, %v311_v8 }
 0x287   : > { %v318_v52 = vpop.permute.xlu0 %317 }
 0x288   : > { %v319_v53 = vsel %vm262_vm0, %v318_v52, %v307_v47 }
 0x289   : > { %323 = vrot.lane.b32.xlu0 %v319_v53, %s805_s20 }
 0x28b   : > { %v321_v54 = vpop.permute.xlu1 %320 }
 0x28c   : > { %v322_v55 = vsel %vm262_vm0, %v321_v54, %v308_v51 }
 0x28d   : > { %325 = vrot.lane.b32.xlu1 %v322_v55, %s805_s20 }
 0x2fb   : > { %v324_v56 = vpop.permute.xlu0 %323 }
 0x2fc   : > { %v327_v57 = vsel %vm262_vm0, %v324_v56, %v307_v47 }
 0x2fd   : > { %333 = vrot.lane.b32.xlu0 %v327_v57, %s806_s23 }
 0x2ff   : > { %v326_v58 = vpop.permute.xlu1 %325 }
 0x300   : > { %v328_v59 = vsel %vm262_vm0, %v326_v58, %v308_v51 }
 0x301   : > { %335 = vrot.lane.b32.xlu1 %v328_v59, %s806_s23 }
 0x36f   : > { %v334_v60 = vpop.permute.xlu0 %333 }
 0x370   : > { %v339_v61 = vadd.f32 %v334_v60, %v327_v57 }
 0x372   : > { %343 = vrot.lane.b32.xlu0 %v339_v61, %s807_s22 }
 0x373   : > { %v336_v62 = vpop.permute.xlu1 %335 }
 0x374   : > { %v340_v63 = vadd.f32 %v336_v62, %v328_v59 }
 0x376   : > { %345 = vrot.lane.b32.xlu1 %v340_v63, %s807_s22 }
 0x3e4   : > { %v344_v7 = vpop.permute.xlu0 %343 }
 0x3e5   : > { %v349_v10 = vadd.f32 %v344_v7, %v329_v6 }
 0x3e7   : > { %v353_v13 = vsub.f32 %v349_v10, %v351_v11 }
 0x3e8   : > { %v346_v18 = vpop.permute.xlu1 %345 }
 0x3e9   : > { %v355_v19 = vadd.f32 %v353_v13, %v299_v39  ;;  %v350_v20 = vadd.f32 %v346_v18, %v330_v17  ;;  %v365_v26 = vmul.f32 %v353_v13, %v994_v35 }
 0x3eb   : > { %v357_v23 = vmul.f32 %v355_v19, %v1021_v12  ;;  %v354_v27 = vsub.f32 %v350_v20, %v352_v21 }
 0x3ed   : > { %v359_v28 = vadd.f32 %v357_v23, %v983_v25  ;;  %v356_v29 = vadd.f32 %v354_v27, %v300_v49  ;;  %v366_v37 = vmul.f32 %v354_v27, %v998_v45 }
 0x3ef   : > { %v361_v30 = vmul.f32 0.0078125, %v359_v28  ;;  %v358_v31 = vmul.f32 %v356_v29, %v1023_v22 }
 0x3f1   : > { %v363_v32 = vadd.f32 %v361_v30, %v307_v47  ;;  %v360_v33 = vadd.f32 %v358_v31, %v992_v34 }
 0x3f3   : > { %v367_v36 = vadd.f32 %v365_v26, %v363_v32  ;;  %v362_v38 = vmul.f32 0.0078125, %v360_v33 }
 0x3f5   : > { %v364_v39 = vadd.f32 %v362_v38, %v308_v51  ;;  %377 = vrot.lane.b32.xlu0 %v367_v36, %s805_s20  ;;  %v369_v54 = vrot.slane %v367_v36, 7  ;;  %v373_v55 = vrot.slane %v367_v36, 1  ;;  %v411_v63 = vmul.f32 4.0, %v367_v36 }
 0x3f7   : > { %v368_v40 = vadd.f32 %v366_v37, %v364_v39 }
 0x3f9   : > { %380 = vrot.lane.b32.xlu1 %v368_v40, %s805_s20  ;;  %v370_v52 = vrot.slane %v368_v40, 7  ;;  %v374_v53 = vrot.slane %v368_v40, 1  ;;  %v412_v5 = vmul.f32 4.0, %v368_v40 }
 0x3fb   : > { %v372_v56 = vsel %vm254_vm1, %v370_v52, %v369_v54  ;;  %v375_v57 = vsel %vm259_vm2, %v373_v55, %v374_v53  ;;  %v371_v60 = vsel %vm254_vm1, %v369_v54, %v370_v52  ;;  %v376_v61 = vsel %vm259_vm2, %v374_v53, %v373_v55 }
 0x3fc   : > { %v389_v58 = vadd.f32 %v375_v57, %v372_v56  ;;  %v390_v1 = vadd.f32 %v376_v61, %v371_v60  ;;  %v236_v55 = vand.u32 127, %v230_v14 }
 0x3fe   : > { %vm237_vm5 = vcmp.eq.s32.totalorder %v236_v55, 0 }
 0x467   : > { %v378_v25 = vpop.permute.xlu0 %377 }
 0x468   : > { %v379_v41 = vsel %vm262_vm0, %v378_v25, %v367_v36 }
 0x469   : > { %383 = vrot.lane.b32.xlu0 %v379_v41, %s805_s20 }
 0x46b   : > { %v381_v42 = vpop.permute.xlu1 %380 }
 0x46c   : > { %v382_v43 = vsel %vm262_vm0, %v381_v42, %v368_v40 }
 0x46d   : > { %385 = vrot.lane.b32.xlu1 %v382_v43, %s805_s20 }
 0x4db   : > { %v384_v34 = vpop.permute.xlu0 %383 }
 0x4dc   : > { %v387_v44 = vsel %vm262_vm0, %v384_v34, %v367_v36 }
 0x4dd   : > { %393 = vrot.lane.b32.xlu0 %v387_v44, %s806_s23 }
 0x4df   : > { %v386_v46 = vpop.permute.xlu1 %385 }
 0x4e0   : > { %v388_v47 = vsel %vm262_vm0, %v386_v46, %v368_v40 }
 0x4e1   : > { %395 = vrot.lane.b32.xlu1 %v388_v47, %s806_s23 }
 0x54f   : > { %v394_v48 = vpop.permute.xlu0 %393 }
 0x550   : > { %v399_v49 = vadd.f32 %v394_v48, %v387_v44 }
 0x552   : > { %403 = vrot.lane.b32.xlu0 %v399_v49, %s807_s22 }
 0x553   : > { %v396_v50 = vpop.permute.xlu1 %395 }
 0x554   : > { %v400_v51 = vadd.f32 %v396_v50, %v388_v47 }
 0x556   : > { %405 = vrot.lane.b32.xlu1 %v400_v51, %s807_s22 }
 0x5c4   : > { %v404_v59 = vpop.permute.xlu0 %403 }
 0x5c5   : > { %v409_v62 = vadd.f32 %v404_v59, %v389_v58 }
 0x5c7   : > { %v1051_v0 = vsub.f32 %v409_v62, %v411_v63  ;;  %v704_v63 = vpop.eup %703 }
 0x5c8   : > { %v406_v2 = vpop.permute.xlu1 %405 }
 0x5c9   : > { %v415_v3 = vadd.f32 %v1051_v0, %v353_v13  ;;  %v410_v4 = vadd.f32 %v406_v2, %v390_v1  ;;  %v425_v18 = vmul.f32 %v1051_v0, %v994_v35 }
 0x5cb   : > { %v417_v6 = vmul.f32 %v415_v3, %v1021_v12  ;;  %v1055_v7 = vsub.f32 %v410_v4, %v412_v5 }
 0x5cd   : > { %v1057_v8 = vadd.f32 %v417_v6, %v359_v28  ;;  %v416_v9 = vadd.f32 %v1055_v7, %v354_v27  ;;  %v426_v23 = vmul.f32 %v1055_v7, %v998_v45 }
 0x5cf   : > { %v421_v10 = vmul.f32 0.0078125, %v1057_v8  ;;  %v418_v11 = vmul.f32 %v416_v9, %v1023_v22  ;;  %v706_v9 = vpop.eup %705 }
 0x5d1   : > { %v423_v17 = vadd.f32 %v421_v10, %v367_v36  ;;  %v1064_v13 = vadd.f32 %v418_v11, %v360_v33 }
 0x5d3   : > { %v1066_v19 = vadd.f32 %v425_v18, %v423_v17  ;;  %v422_v20 = vmul.f32 0.0078125, %v1064_v13 }
 0x5d5   : > { %v424_v21 = vadd.f32 %v422_v20, %v368_v40  ;;  %437 = vrot.lane.b32.xlu0 %v1066_v19, %s805_s20  ;;  %v429_v35 = vrot.slane %v1066_v19, 7  ;;  %v433_v48 = vrot.slane %v1066_v19, 1  ;;  %v471_v54 = vmul.f32 4.0, %v1066_v19 }
 0x5d7   : > { %v1073_v27 = vadd.f32 %v426_v23, %v424_v21 }
 0x5d9   : > { %440 = vrot.lane.b32.xlu1 %v1073_v27, %s805_s20  ;;  %v430_v28 = vrot.slane %v1073_v27, 7  ;;  %v434_v47 = vrot.slane %v1073_v27, 1  ;;  %v472_v61 = vmul.f32 4.0, %v1073_v27 }
 0x5db   : > { %v432_v29 = vsel %vm254_vm1, %v430_v28, %v429_v35  ;;  %v431_v30 = vsel %vm254_vm1, %v429_v35, %v430_v28  ;;  %v435_v49 = vsel %vm259_vm2, %v433_v48, %v434_v47  ;;  %v436_v52 = vsel %vm259_vm2, %v434_v47, %v433_v48 }
 0x5dc   : > { %v481_v45 = vsub.f32 %v1066_v19, %v432_v29  ;;  %v482_v31 = vsub.f32 %v1073_v27, %v431_v30  ;;  %v449_v50 = vadd.f32 %v435_v49, %v432_v29  ;;  %v450_v57 = vadd.f32 %v436_v52, %v431_v30 }
 0x5de   : > { %v483_v32 = vmul.f32 8.0, %v481_v45  ;;  %v484_v26 = vmul.f32 8.0, %v482_v31 }
 0x5e0   : > { %v485_v33 = vsel %vm233_vm3, 0.0, %v483_v32  ;;  %505 = vst.msk [vmem:[%s1087_s30 + $0x8] sm:$0xff] %vm503_vm4, %v484_v26 }
 0x5e1   : > { %504 = vst.msk [vmem:[%s1087_s30] sm:$0xff] %vm503_vm4, %v485_v33 }
 0x647   : > { %v438_v36 = vpop.permute.xlu0 %437 }
 0x648   : > { %v439_v38 = vsel %vm262_vm0, %v438_v36, %v1066_v19 }
 0x649   : > { %443 = vrot.lane.b32.xlu0 %v439_v38, %s805_s20 }
 0x64b   : > { %v441_v39 = vpop.permute.xlu1 %440 }
 0x64c   : > { %v442_v37 = vsel %vm262_vm0, %v441_v39, %v1073_v27 }
 0x64d   : > { %445 = vrot.lane.b32.xlu1 %v442_v37, %s805_s20 }
 0x6bb   : > { %v444_v40 = vpop.permute.xlu0 %443 }
 0x6bc   : > { %v447_v25 = vsel %vm262_vm0, %v444_v40, %v1066_v19 }
 0x6bd   : > { %453 = vrot.lane.b32.xlu0 %v447_v25, %s806_s23 }
 0x6bf   : > { %v446_v41 = vpop.permute.xlu1 %445 }
 0x6c0   : > { %v448_v42 = vsel %vm262_vm0, %v446_v41, %v1073_v27 }
 0x6c1   : > { %455 = vrot.lane.b32.xlu1 %v448_v42, %s806_s23 }
 0x72f   : > { %v454_v43 = vpop.permute.xlu0 %453 }
 0x730   : > { %v459_v34 = vadd.f32 %v454_v43, %v447_v25 }
 0x732   : > { %463 = vrot.lane.b32.xlu0 %v459_v34, %s807_s22 }
 0x733   : > { %v456_v44 = vpop.permute.xlu1 %455 }
 0x734   : > { %v460_v46 = vadd.f32 %v456_v44, %v448_v42 }
 0x736   : > { %487 = vrot.lane.b32.xlu0 %v447_v25, %s807_s22  ;;  %465 = vrot.lane.b32.xlu1 %v460_v46, %s807_s22 }
 0x73a   : > { %489 = vrot.lane.b32.xlu1 %v448_v42, %s807_s22 }
 0x7a4   : > { %v464_v51 = vpop.permute.xlu0 %463 }
 0x7a5   : > { %v469_v53 = vadd.f32 %v464_v51, %v449_v50 }
 0x7a7   : > { %v473_v56 = vsub.f32 %v469_v53, %v471_v54 }
 0x7a8   : > { %v488_v58 = vpop.permute.xlu0 %487  ;;  %v466_v16 = vpop.permute.xlu1 %465 }
 0x7a9   : > { %v475_v59 = vadd.f32 %v473_v56, %v1051_v0  ;;  %v493_v24 = vsub.f32 %v1066_v19, %v488_v58  ;;  %v470_v60 = vadd.f32 %v466_v16, %v450_v57 }
 0x7ab   : > { %v477_v15 = vmul.f32 %v475_v59, %v1021_v12  ;;  %v495_v62 = vmul.f32 8.0, %v493_v24  ;;  %v474_v14 = vsub.f32 %v470_v60, %v472_v61 }
 0x7ac   : > { %v490_v1 = vpop.permute.xlu1 %489 }
 0x7ad   : > { %v479_v2 = vadd.f32 %v477_v15, %v1057_v8  ;;  %v497_v3 = vsel %vm237_vm5, 0.0, %v495_v62  ;;  %v476_v0 = vadd.f32 %v474_v14, %v1055_v7  ;;  %v494_v4 = vsub.f32 %v1073_v27, %v490_v1 }
 0x7ae   : > { %637 = vst.msk [vmem:[%s1087_s30 + $0x10] sm:$0xff] %vm503_vm4, %v497_v3 }
 0x7af   : > { %v501_v12 = vmul.f32 %v704_v63, %v479_v2  ;;  %v478_v5 = vmul.f32 %v476_v0, %v1023_v22  ;;  %v496_v6 = vmul.f32 8.0, %v494_v4 }
 0x7b1   : > { %639 = vst.msk [vmem:[%s1087_s30 + $0x20] sm:$0xff] %vm503_vm4, %v501_v12  ;;  %v480_v8 = vadd.f32 %v478_v5, %v1064_v13  ;;  %v498_v7 = vsel %vm237_vm5, 0.0, %v496_v6 }
 0x7b2   : > { %638 = vst.msk [vmem:[%s1087_s30 + $0x18] sm:$0xff] %vm503_vm4, %v498_v7 }
 0x7b3   : > { %v502_v22 = vmul.f32 %v706_v9, %v480_v8 }
 0x7b5   : > { %640 = vst.msk [vmem:[%s1087_s30 + $0x28] sm:$0xff] %vm503_vm4, %v502_v22 }
 0x7b6   : > { %749 = shalt.err (!%p746_p1)
}
 0x7b7   : > { %s750_s20 = scalar_lea.hbm %s1141_s5, 768  ;;  %s754_s26 = scalar_lea.hbm %s1191_s3, 2048 }
 0x7b8   : > { %p751_p3 = scmp.ne.s32.totalorder %s1141_s5, %s750_s20  ;;  %p755_p2 = scmp.lt.s32.totalorder %s1141_s5, %s1191_s3 }
 0x7b9   : > { %p756_p6 = scmp.lt.s32.totalorder %s754_s26, %s750_s20 }
 0x7ba   : > { %p752_p9 = pnand %p751_p3, %p1201_p13 }
 0x7bb   : > { %p757_p11 = por %p756_p6, %p755_p2 }
 0x7bc   : > { %p753_p0 = pneg %p752_p9 }
 0x7be   : > { %p758_p12 = pnand %p757_p11, %p753_p0 }
 0x7c0   : > { %761 = shalt.err (!%p758_p12)
}
 0x7c1   : > { %s809_s29 = smov 128   ;;  %s810_s30 = smov 8  }
 0x7c2   : > { %652 = dma.vmem_to_hbm [thread:$0]  (%p1201_p13), %s1143_s4, 768, %s1141_s5, %s513_s16, %s809_s29, %s809_s29, %s810_s30  }
 0x7c3 PF: > { %s541_s10 = sand.u32 1, %s788_s12   ;;  %p1202_p4 = scmp.ne.s32.totalorder %s1197_s25, 0 }
 0x7c4   : > { %p1203_p5 = scmp.ge.s32.totalorder %s800_s15, 2  ;;  %s542_s11 = scalar_lea.sflag [#allocation4], %s541_s10 }
 0x7c6   : > { %p659_p7 = pnand %p1203_p5, %p1202_p4 }
 0x7c8   : > { %p660_p8 = pneg %p659_p7 }
 0x7ca   : > { %783 = dma.done.wait (%p660_p8), %s542_s11, 768  }
 0x7cb   : > { %785 = vsyncadd (%p660_p8), %s542_s11, 4294966528  ;;  %p16_p10 = scmp.ge.s32.totalorder %s856_s18, 4   ;;  %s1204_s12 = smov %s792_s13 }
 0x7cc   : > { %s1205_s13 = smov %s796_s14  ;;  %s1206_s14 = smov %s868_s21 }
 0x7cd   : > { %s1207_s15 = smov %s856_s18  ;;  %18 = sbr.rel (!%p16_p10) target bundleno = 5 (0x5), region = 85 }
 0x7d2   :  { %547 = vsyncpa [#allocation3], 1 }
 0x7d3   :  { %549 = vsyncpa [#allocation3 + $0x1], 1 }
 0x7d4   :  { %550 = vsyncpa [#allocation4], 1 }
 0x7d5   :  { %552 = vsyncpa [#allocation4 + $0x1], 1 }

</bundles_post_ra>
